<compile_context>
chip_gen: v7x
topology: tpu7x:2x2x1
jax: 0.10.0
libtpu: 0.0.40
codegen_flags: <defaults>
</compile_context>

<pallas_src>
import functools

import jax
import jax.numpy as jnp
from jax import lax
from jax.experimental import pallas as pl
from jax.experimental.pallas import tpu as pltpu

_EPS = 1e-5


# ------------------------------- kernels -------------------------------------

def _stats_kernel(x_ref, sum_ref, sq_ref):
    # One fused pass over x: per-(batch, channel) sum and sum-of-squares, accumulated in the
    # VMEM-resident output blocks across the L grid axis (written back once per batch element).
    j = pl.program_id(1)
    x = x_ref[...].astype(jnp.float32)

    @pl.when(j == 0)
    def _():
        sum_ref[...] = jnp.zeros_like(sum_ref)
        sq_ref[...] = jnp.zeros_like(sq_ref)

    sum_ref[...] += jnp.sum(x, axis=1, keepdims=True)
    sq_ref[...] += jnp.sum(x * x, axis=1, keepdims=True)


def _block_apply_kernel(scale_ref, shift_ref, w_ref, b_ref, x_ref,
                        o_ref, sum_ref, sq_ref, *, valid_len, tile_l):
    # scale/shift: (C,1) folded BN;  w: (Co,C);  b: (Co,1);  x: (C,tL) any dtype;  o: (Co,tL) bf16.
    # sum/sq: (Co,1) per-batch accumulators (resident across the L axis) of the f32 output.
    j = pl.program_id(1)
    x = x_ref[...].astype(jnp.float32)
    h = jnp.maximum(x * scale_ref[...] + shift_ref[...], 0.0)        # folded BN + ReLU (1 FMA + max)
    y = jnp.dot(w_ref[...], h, preferred_element_type=jnp.float32) + b_ref[...]   # 1x1 conv == matmul
    if valid_len is not None:
        # zero the padded tail so downstream stats / reads stay exact
        lane = lax.broadcasted_iota(jnp.int32, y.shape, 1)
        y = jnp.where(lane < (valid_len - j * tile_l), y, 0.0)
    o_ref[...] = y.astype(o_ref.dtype)

    @pl.when(j == 0)
    def _():
        sum_ref[...] = jnp.zeros_like(sum_ref)
        sq_ref[...] = jnp.zeros_like(sq_ref)

    sum_ref[...] += jnp.sum(y, axis=1, keepdims=True)
    sq_ref[...] += jnp.sum(y * y, axis=1, keepdims=True)


def _combine_kernel_shared(wr_ref, br_ref, g_ref, x_ref, h_ref, o_ref):
    # c is None -> residual conv input is x itself (single DMA of x per tile).
    x = x_ref[...].astype(jnp.float32)
    res = jnp.dot(wr_ref[...], x, preferred_element_type=jnp.float32) + br_ref[...]
    o_ref[...] = (x + h_ref[...].astype(jnp.float32) * g_ref[...] + res).astype(o_ref.dtype)


def _combine_kernel_sep(wr_ref, br_ref, g_ref, x_ref, c_ref, h_ref, o_ref):
    # separate conditioning input c for residual_conv.
    x = x_ref[...].astype(jnp.float32)
    res = jnp.dot(wr_ref[...], c_ref[...].astype(jnp.float32),
                  preferred_element_type=jnp.float32) + br_ref[...]
    o_ref[...] = (x + h_ref[...].astype(jnp.float32) * g_ref[...] + res).astype(o_ref.dtype)


# ------------------------------- helpers --------------------------------------

def _vmem_limit_bytes():
    """Generation-aware scoped-VMEM request (~3/4 of physical, capped at 100 MiB)."""
    try:
        cap = int(pltpu.get_tpu_info().vmem_capacity_bytes)
        return int(min((cap * 3) // 4, 100 * 1024 * 1024))
    except Exception:
        return 48 * 1024 * 1024            # safe on v5e / v6e / v7x


def _compiler_params(dim_sem, vmem_limit):
    return pltpu.CompilerParams(dimension_semantics=dim_sem,
                                vmem_limit_bytes=int(vmem_limit))


def _choose_tiling(length, cap):
    """Return (padded_length, tile): tile is a multiple of 128, <= cap, dividing padded_length."""
    cap = max(128, (cap // 128) * 128)
    padded = ((length + 127) // 128) * 128
    if padded <= cap:
        return padded, padded
    t = cap
    while t >= 128:
        if padded % t == 0:
            return padded, t
        t -= 128
    return padded, 128                      # 128 always divides padded


def _default_tile_cap(ci, co, x_bytes, vmem_limit):
    """Largest tile cap such that the worst-case streamed, double-buffered tiles leave headroom."""
    per_col = 2 * (2 * ci * x_bytes + co * 2 + co * x_bytes)   # x + c (f32-ish) + bf16 h + out, 2x buf
    cap = int(vmem_limit * 0.6) // max(per_col, 1)
    return max(128, min(2048, (cap // 128) * 128))


def _fold_bn(ch_sum, ch_sumsq, count, gamma, beta):
    # NOTE: E[y^2] - E[y]^2 in f32; exact sums are accumulated in f32 so this is fine for
    # roughly zero-mean activations (post-BN / post-ReLU here).  Shifted sums would be needed
    # if production activations carried very large per-channel means.
    mean = ch_sum / count
    var = jnp.maximum(ch_sumsq / count - mean * mean, 0.0)     # biased var (training-mode BN)
    inv_std = lax.rsqrt(var + _EPS)
    scale = gamma.astype(jnp.float32) * inv_std
    shift = beta.astype(jnp.float32) - mean * scale
    return scale.reshape(-1, 1), shift.reshape(-1, 1)


# ------------------------------- pallas wrappers -------------------------------

def _stats(x, tl, vmem_limit):
    """Per-channel sum / sumsq of x over (N, L) with a single HBM read of x."""
    n, ci, lp = x.shape
    gl = lp // tl
    sums, sqs = pl.pallas_call(
        _stats_kernel,
        grid=(n, gl),
        in_specs=[pl.BlockSpec((None, ci, tl), lambda i, j: (i, 0, j))],
        out_specs=[pl.BlockSpec((None, ci, 1), lambda i, j: (i, 0, 0)),
                   pl.BlockSpec((None, ci, 1), lambda i, j: (i, 0, 0))],
        out_shape=[jax.ShapeDtypeStruct((n, ci, 1), jnp.float32),
                   jax.ShapeDtypeStruct((n, ci, 1), jnp.float32)],
        compiler_params=_compiler_params(("parallel", "arbitrary"), vmem_limit),
    )(x)
    return jnp.sum(sums, axis=0)[:, 0], jnp.sum(sqs, axis=0)[:, 0]


def _block_apply(x, scale, shift, w, b, *, tl, valid_len, out_dtype, vmem_limit):
    """Tiled  h = Conv1x1(ReLU(x*scale + shift); W, b)  over NCL input, plus per-batch
    per-channel (sum, sumsq) of h (accumulated in resident output blocks).  Grid = (N, L//tl)."""
    n, ci, lp = x.shape
    co = w.shape[0]
    gl = lp // tl
    const2 = lambda i, j: (0, 0)
    kernel = functools.partial(_block_apply_kernel, valid_len=valid_len, tile_l=tl)
    h, s, q = pl.pallas_call(
        kernel,
        grid=(n, gl),
        in_specs=[
            pl.BlockSpec((ci, 1), const2),                               # folded BN scale
            pl.BlockSpec((ci, 1), const2),                               # folded BN shift
            pl.BlockSpec((co, ci), const2),                              # W
            pl.BlockSpec((co, 1), const2),                               # b
            pl.BlockSpec((None, ci, tl), lambda i, j: (i, 0, j)),        # x tile (N squeezed)
        ],
        out_specs=[
            pl.BlockSpec((None, co, tl), lambda i, j: (i, 0, j)),        # h tile (bf16)
            pl.BlockSpec((None, co, 1), lambda i, j: (i, 0, 0)),         # per-batch sum (resident)
            pl.BlockSpec((None, co, 1), lambda i, j: (i, 0, 0)),         # per-batch sumsq (resident)
        ],
        out_shape=[
            jax.ShapeDtypeStruct((n, co, lp), out_dtype),
            jax.ShapeDtypeStruct((n, co, 1), jnp.float32),
            jax.ShapeDtypeStruct((n, co, 1), jnp.float32),
        ],
        compiler_params=_compiler_params(("parallel", "arbitrary"), vmem_limit),
    )(scale, shift, w, b, x)
    return h, s, q


def _combine(x, h, gate, w_res, b_res, c, *, tl, out_dtype, vmem_limit):
    """out = x + gate*h + (W_res @ c + b_res), tiled over (N, L)."""
    n, ci, lp = x.shape
    co = h.shape[1]
    gl = lp // tl
    gate3 = gate.reshape(n, co, 1).astype(jnp.float32)
    br = b_res.reshape(-1, 1).astype(jnp.float32)
    wr = w_res.astype(jnp.float32)
    const2 = lambda i, j: (0, 0)
    g_spec = pl.BlockSpec((None, co, 1), lambda i, j: (i, 0, 0))
    x_spec = pl.BlockSpec((None, ci, tl), lambda i, j: (i, 0, j))
    h_spec = pl.BlockSpec((None, co, tl), lambda i, j: (i, 0, j))
    o_spec = pl.BlockSpec((None, co, tl), lambda i, j: (i, 0, j))

    if c is None:
        kernel = _combine_kernel_shared
        in_specs = [pl.BlockSpec((co, ci), const2), pl.BlockSpec((co, 1), const2),
                    g_spec, x_spec, h_spec]
        args = (wr, br, gate3, x, h)
    else:
        cd = c.shape[1]
        kernel = _combine_kernel_sep
        c_spec = pl.BlockSpec((None, cd, tl), lambda i, j: (i, 0, j))
        in_specs = [pl.BlockSpec((co, cd), const2), pl.BlockSpec((co, 1), const2),
                    g_spec, x_spec, c_spec, h_spec]
        args = (wr, br, gate3, x, c, h)

    return pl.pallas_call(
        kernel,
        grid=(n, gl),
        in_specs=in_specs,
        out_specs=o_spec,
        out_shape=jax.ShapeDtypeStruct((n, co, lp), out_dtype),
        compiler_params=_compiler_params(("parallel", "parallel"), vmem_limit),
    )(*args)


# ------------------------------- forward --------------------------------------

def resnet_block_c_forward(params, x, c=None, *, tile_l=None):
    """ResnetBlockC.forward in NCL layout (requires dim == dim_out, see header note)."""
    n, ci, length = x.shape
    co = params["w1"].shape[0]
    if co != ci:
        raise ValueError("ResnetBlockC requires dim == dim_out (identity shortcut).")
    out_dtype = x.dtype
    h_dtype = jnp.bfloat16                           # bf16 intermediates in HBM (mem-bound kernel)
    vmem_limit = _vmem_limit_bytes()
    x_bytes = jnp.dtype(x.dtype).itemsize
    if tile_l is None:
        tile_l = _default_tile_cap(ci, co, x_bytes, vmem_limit)
    lp, tl = _choose_tiling(length, tile_l)
    if lp != length:                                 # pad L to a 128-multiple; masked in-kernel
        pad = lp - length
        x = jnp.pad(x, ((0, 0), (0, 0), (0, pad)))
        if c is not None:
            c = jnp.pad(c, ((0, 0), (0, 0), (0, pad)))
    valid_len = length if lp != length else None
    count = float(n * length)

    # ---- Block1: BN stats of x via one fused Pallas read (zero padding contributes nothing) ----
    s1, q1 = _stats(x, tl, vmem_limit)
    scale1, shift1 = _fold_bn(s1, q1, count, params["bn1_gamma"], params["bn1_beta"])
    w1 = params["w1"].astype(jnp.float32)
    b1 = params["b1"].reshape(-1, 1).astype(jnp.float32)
    h1, h1_sum, h1_sq = _block_apply(x, scale1, shift1, w1, b1, tl=tl, valid_len=valid_len,
                                     out_dtype=h_dtype, vmem_limit=vmem_limit)

    # ---- Block2: BN stats of h1 recovered from block1's fused per-batch partials ----
    s2 = jnp.sum(h1_sum, axis=0)[:, 0]
    q2 = jnp.sum(h1_sq, axis=0)[:, 0]
    scale2, shift2 = _fold_bn(s2, q2, count, params["bn2_gamma"], params["bn2_beta"])
    w2 = params["w2"].astype(jnp.float32)
    b2 = params["b2"].reshape(-1, 1).astype(jnp.float32)
    h2, h2_sum, _ = _block_apply(h1, scale2, shift2, w2, b2, tl=tl, valid_len=valid_len,
                                 out_dtype=h_dtype, vmem_limit=vmem_limit)

    # ---- SqueezeExcite gate: per-(n,c) mean over L from fused partials; tiny MLP in JAX ----
    avg = h2_sum[:, :, 0] / float(length)                                    # (N, Co)
    z = avg @ params["w_se1"].T.astype(jnp.float32) + params["b_se1"]
    z = z * jax.nn.sigmoid(z)                                                # SiLU
    gate = jax.nn.sigmoid(z @ params["w_se2"].T.astype(jnp.float32) + params["b_se2"])

    # ---- Fused: identity shortcut + SE gating + residual 1x1 conv + add ----
    out = _combine(x, h2, gate, params["w_res"], params["b_res"], c, tl=tl,
                   out_dtype=out_dtype, vmem_limit=vmem_limit)
    if lp != length:
        out = out[:, :, :length]
    return out


# ------------------------------- reference ------------------------------------

def _reference(params, x, c=None):
    def bn_relu(v, gamma, beta):
        mean = jnp.mean(v, axis=(0, 2), keepdims=True)
        var = jnp.mean((v - mean) ** 2, axis=(0, 2), keepdims=True)
        h = (v - mean) * lax.rsqrt(var + _EPS)
        h = h * gamma[None, :, None] + beta[None, :, None]
        return jnp.maximum(h, 0.0)

    def conv1x1(v, w, b):
        return jnp.einsum("oc,ncl->nol", w, v,
                          precision=jax.lax.Precision.HIGHEST) + b[None, :, None]

    h = conv1x1(bn_relu(x, params["bn1_gamma"], params["bn1_beta"]), params["w1"], params["b1"])
    h = conv1x1(bn_relu(h, params["bn2_gamma"], params["bn2_beta"]), params["w2"], params["b2"])
    avg = jnp.mean(h, axis=2)
    z = avg @ params["w_se1"].T + params["b_se1"]
    z = z * jax.nn.sigmoid(z)
    gate = jax.nn.sigmoid(z @ params["w_se2"].T + params["b_se2"])
    h = h * gate[:, :, None]
    cc = x if c is None else c
    res = conv1x1(cc, params["w_res"], params["b_res"])
    return x + h + res


# ------------------------------- demo / check ---------------------------------

if __name__ == "__main__":
    key = jax.random.PRNGKey(0)
    ks = jax.random.split(key, 14)

    # ResnetBlockC(c_dim=4, dim=4, dim_out=4): dim must equal dim_out (see header note).
    N, C, L = 2, 4, 256
    DIM_INNER = max(C // 4, 16)      # SqueezeExcite hidden width

    x = jax.random.normal(ks[0], (N, C, L), dtype=jnp.float32)

    def conv_init(kw, kb, co, ci):   # PyTorch Conv1d/Linear default init
        lim = 1.0 / (ci ** 0.5)
        w = jax.random.uniform(kw, (co, ci), jnp.float32, -lim, lim)
        b = jax.random.uniform(kb, (co,), jnp.float32, -lim, lim)
        return w, b

    w1, b1 = conv_init(ks[1], ks[2], C, C)
    w2, b2 = conv_init(ks[3], ks[4], C, C)
    w_se1, b_se1 = conv_init(ks[5], ks[6], DIM_INNER, C)
    w_se2, b_se2 = conv_init(ks[7], ks[8], C, DIM_INNER)
    w_res, b_res = conv_init(ks[9], ks[10], C, C)

    params = dict(
        bn1_gamma=jnp.ones((C,), jnp.float32), bn1_beta=jnp.zeros((C,), jnp.float32),
        bn2_gamma=jnp.ones((C,), jnp.float32), bn2_beta=jnp.zeros((C,), jnp.float32),
        w1=w1, b1=b1, w2=w2, b2=b2,
        w_se1=w_se1, b_se1=b_se1, w_se2=w_se2, b_se2=b_se2,
        w_res=w_res, b_res=b_res,
    )

    # Tolerance is loose: matmuls use DEFAULT (single-pass bf16 MXU) precision and h1/h2 are
    # stored as bf16 in HBM; a real bug would produce O(1) errors.
    TOL = 0.15

    # c = None path (module default)
    fwd = jax.jit(lambda p, v: resnet_block_c_forward(p, v))
    out = jax.block_until_ready(fwd(params, x))
    ref = jax.block_until_ready(_reference(params, x))
    assert out.shape == (N, C, L), out.shape
    err = float(jnp.max(jnp.abs(out - ref)))
    assert err < TOL, err

    # explicit conditioning input c for residual_conv
    c_in = jax.random.normal(ks[11], (N, C, L), dtype=jnp.float32)
    fwd_c = jax.jit(lambda p, v, cv: resnet_block_c_forward(p, v, cv))
    out_c = jax.block_until_ready(fwd_c(params, x, c_in))
    ref_c = jax.block_until_ready(_reference(params, x, c_in))
    err_c = float(jnp.max(jnp.abs(out_c - ref_c)))
    assert err_c < TOL, err_c

    # awkward L (not a multiple of 128): exercises the padded / masked-tail path
    L_odd = 200
    x_odd = jax.random.normal(ks[12], (N, C, L_odd), dtype=jnp.float32)
    out_o = jax.block_until_ready(jax.jit(lambda p, v: resnet_block_c_forward(p, v))(params, x_odd))
    ref_o = jax.block_until_ready(_reference(params, x_odd))
    assert out_o.shape == (N, C, L_odd), out_o.shape
    err_o = float(jnp.max(jnp.abs(out_o - ref_o)))
    assert err_o < TOL, err_o

    print("KERNEL_OK")
</pallas_src>

<mosaic_0001>
module attributes {stable_mosaic.version = 11 : i64} {
  func.func @_stats_kernel(%arg0: i32, %arg1: i32, %arg2: memref<1x4x256xf32, #tpu.memory_space<vmem>>, %arg3: memref<1x4x1xf32, #tpu.memory_space<vmem>>, %arg4: memref<1x4x1xf32, #tpu.memory_space<vmem>>) attributes {dimension_semantics = [#tpu.dimension_semantics<parallel>, #tpu.dimension_semantics<arbitrary>], iteration_bounds = array<i64: 2, 1>, scalar_prefetch = 0 : i64, scratch_operands = 0 : i64, tpu.core_type = #tpu.core_type<tc>, window_params = [{transform_indices = @transform_0, window_bounds = array<i64: 1, 4, 256>}, {transform_indices = @transform_1, window_bounds = array<i64: 1, 4, 1>}, {transform_indices = @transform_2, window_bounds = array<i64: 1, 4, 1>}]} {
    %c0 = arith.constant 0 : index
    %c0_0 = arith.constant 0 : index
    %c0_1 = arith.constant 0 : index
    %0 = vector.load %arg2[%c0, %c0_0, %c0_1] : memref<1x4x256xf32, #tpu.memory_space<vmem>>, vector<1x4x256xf32>
    %1 = vector.shape_cast %0 : vector<1x4x256xf32> to vector<4x256xf32>
    %c0_i32 = arith.constant 0 : i32
    %2 = arith.cmpi eq, %arg1, %c0_i32 : i32
    %3 = arith.extui %2 : i1 to i32
    %c0_i32_2 = arith.constant 0 : i32
    %4 = arith.cmpi ne, %3, %c0_i32_2 : i32
    scf.if %4 {
      %cst_16 = arith.constant 0.000000e+00 : f32
      %22 = vector.broadcast %cst_16 : f32 to vector<4x1xf32>
      %c0_17 = arith.constant 0 : index
      %c0_18 = arith.constant 0 : index
      %c0_19 = arith.constant 0 : index
      %23 = vector.load %arg3[%c0_17, %c0_18, %c0_19] : memref<1x4x1xf32, #tpu.memory_space<vmem>>, vector<1x4x1xf32>
      %24 = vector.shape_cast %23 : vector<1x4x1xf32> to vector<4x1xf32>
      %25 = vector.shape_cast %22 : vector<4x1xf32> to vector<1x4x1xf32>
      tpu.vector_store %arg3[%c0_17, %c0_18, %c0_19], %25 {strides = array<i32>} : memref<1x4x1xf32, #tpu.memory_space<vmem>>, vector<1x4x1xf32>,
      %cst_20 = arith.constant 0.000000e+00 : f32
      %26 = vector.broadcast %cst_20 : f32 to vector<4x1xf32>
      %c0_21 = arith.constant 0 : index
      %c0_22 = arith.constant 0 : index
      %c0_23 = arith.constant 0 : index
      %27 = vector.load %arg4[%c0_21, %c0_22, %c0_23] : memref<1x4x1xf32, #tpu.memory_space<vmem>>, vector<1x4x1xf32>
      %28 = vector.shape_cast %27 : vector<1x4x1xf32> to vector<4x1xf32>
      %29 = vector.shape_cast %26 : vector<4x1xf32> to vector<1x4x1xf32>
      tpu.vector_store %arg4[%c0_21, %c0_22, %c0_23], %29 {strides = array<i32>} : memref<1x4x1xf32, #tpu.memory_space<vmem>>, vector<1x4x1xf32>,
    } else {
    }
    %c0_3 = arith.constant 0 : index
    %c0_4 = arith.constant 0 : index
    %c0_5 = arith.constant 0 : index
    %5 = vector.load %arg3[%c0_3, %c0_4, %c0_5] : memref<1x4x1xf32, #tpu.memory_space<vmem>>, vector<1x4x1xf32>
    %6 = vector.shape_cast %5 : vector<1x4x1xf32> to vector<4x1xf32>
    %cst = arith.constant dense<0.000000e+00> : vector<4xf32>
    %7 = vector.multi_reduction <add>, %1, %cst [1] : vector<4x256xf32> to vector<4xf32>
    %8 = vector.shape_cast %7 : vector<4xf32> to vector<4x1xf32>
    %9 = arith.addf %6, %8 : vector<4x1xf32>
    %c0_6 = arith.constant 0 : index
    %c0_7 = arith.constant 0 : index
    %c0_8 = arith.constant 0 : index
    %10 = vector.load %arg3[%c0_6, %c0_7, %c0_8] : memref<1x4x1xf32, #tpu.memory_space<vmem>>, vector<1x4x1xf32>
    %11 = vector.shape_cast %10 : vector<1x4x1xf32> to vector<4x1xf32>
    %12 = vector.shape_cast %9 : vector<4x1xf32> to vector<1x4x1xf32>
    tpu.vector_store %arg3[%c0_6, %c0_7, %c0_8], %12 {strides = array<i32>} : memref<1x4x1xf32, #tpu.memory_space<vmem>>, vector<1x4x1xf32>,
    %c0_9 = arith.constant 0 : index
    %c0_10 = arith.constant 0 : index
    %c0_11 = arith.constant 0 : index
    %13 = vector.load %arg4[%c0_9, %c0_10, %c0_11] : memref<1x4x1xf32, #tpu.memory_space<vmem>>, vector<1x4x1xf32>
    %14 = vector.shape_cast %13 : vector<1x4x1xf32> to vector<4x1xf32>
    %15 = arith.mulf %1, %1 : vector<4x256xf32>
    %cst_12 = arith.constant dense<0.000000e+00> : vector<4xf32>
    %16 = vector.multi_reduction <add>, %15, %cst_12 [1] : vector<4x256xf32> to vector<4xf32>
    %17 = vector.shape_cast %16 : vector<4xf32> to vector<4x1xf32>
    %18 = arith.addf %14, %17 : vector<4x1xf32>
    %c0_13 = arith.constant 0 : index
    %c0_14 = arith.constant 0 : index
    %c0_15 = arith.constant 0 : index
    %19 = vector.load %arg4[%c0_13, %c0_14, %c0_15] : memref<1x4x1xf32, #tpu.memory_space<vmem>>, vector<1x4x1xf32>
    %20 = vector.shape_cast %19 : vector<1x4x1xf32> to vector<4x1xf32>
    %21 = vector.shape_cast %18 : vector<4x1xf32> to vector<1x4x1xf32>
    tpu.vector_store %arg4[%c0_13, %c0_14, %c0_15], %21 {strides = array<i32>} : memref<1x4x1xf32, #tpu.memory_space<vmem>>, vector<1x4x1xf32>,
    return
  }
  func.func @transform_0(%arg0: i32, %arg1: i32) -> (i32, i32, i32) {
    %c0_i32 = arith.constant 0 : i32
    %c0_i32_0 = arith.constant 0 : i32
    return %arg0, %c0_i32, %arg1 : i32, i32, i32
  }
  func.func @transform_1(%arg0: i32, %arg1: i32) -> (i32, i32, i32) {
    %c0_i32 = arith.constant 0 : i32
    %c0_i32_0 = arith.constant 0 : i32
    %c0_i32_1 = arith.constant 0 : i32
    return %arg0, %c0_i32, %c0_i32_0 : i32, i32, i32
  }
  func.func @transform_2(%arg0: i32, %arg1: i32) -> (i32, i32, i32) {
    %c0_i32 = arith.constant 0 : i32
    %c0_i32_0 = arith.constant 0 : i32
    %c0_i32_1 = arith.constant 0 : i32
    return %arg0, %c0_i32, %c0_i32_0 : i32, i32, i32
  }
}

module attributes {stable_mosaic.version = 11 : i64} {
  func.func @_block_apply_kernel(%arg0: i32, %arg1: i32, %arg2: memref<4x1xf32, #tpu.memory_space<vmem>>, %arg3: memref<4x1xf32, #tpu.memory_space<vmem>>, %arg4: memref<4x4xf32, #tpu.memory_space<vmem>>, %arg5: memref<4x1xf32, #tpu.memory_space<vmem>>, %arg6: memref<1x4x256xf32, #tpu.memory_space<vmem>>, %arg7: memref<1x4x256xbf16, #tpu.memory_space<vmem>>, %arg8: memref<1x4x1xf32, #tpu.memory_space<vmem>>, %arg9: memref<1x4x1xf32, #tpu.memory_space<vmem>>) attributes {dimension_semantics = [#tpu.dimension_semantics<parallel>, #tpu.dimension_semantics<arbitrary>], iteration_bounds = array<i64: 2, 1>, scalar_prefetch = 0 : i64, scratch_operands = 0 : i64, tpu.core_type = #tpu.core_type<tc>, window_params = [{pipeline_mode = #tpu.pipeline_mode<synchronous>, transform_indices = @transform_0, window_bounds = array<i64: 4, 1>}, {pipeline_mode = #tpu.pipeline_mode<synchronous>, transform_indices = @transform_1, window_bounds = array<i64: 4, 1>}, {pipeline_mode = #tpu.pipeline_mode<synchronous>, transform_indices = @transform_2, window_bounds = array<i64: 4, 4>}, {pipeline_mode = #tpu.pipeline_mode<synchronous>, transform_indices = @transform_3, window_bounds = array<i64: 4, 1>}, {transform_indices = @transform_4, window_bounds = array<i64: 1, 4, 256>}, {transform_indices = @transform_5, window_bounds = array<i64: 1, 4, 256>}, {transform_indices = @transform_6, window_bounds = array<i64: 1, 4, 1>}, {transform_indices = @transform_7, window_bounds = array<i64: 1, 4, 1>}]} {
    %c0 = arith.constant 0 : index
    %c0_0 = arith.constant 0 : index
    %c0_1 = arith.constant 0 : index
    %0 = vector.load %arg6[%c0, %c0_0, %c0_1] : memref<1x4x256xf32, #tpu.memory_space<vmem>>, vector<1x4x256xf32>
    %1 = vector.shape_cast %0 : vector<1x4x256xf32> to vector<4x256xf32>
    %c0_2 = arith.constant 0 : index
    %c0_3 = arith.constant 0 : index
    %2 = vector.load %arg2[%c0_2, %c0_3] : memref<4x1xf32, #tpu.memory_space<vmem>>, vector<4x1xf32>
    %3 = vector.broadcast %2 : vector<4x1xf32> to vector<4x256xf32>
    %4 = arith.mulf %1, %3 : vector<4x256xf32>
    %c0_4 = arith.constant 0 : index
    %c0_5 = arith.constant 0 : index
    %5 = vector.load %arg3[%c0_4, %c0_5] : memref<4x1xf32, #tpu.memory_space<vmem>>, vector<4x1xf32>
    %6 = vector.broadcast %5 : vector<4x1xf32> to vector<4x256xf32>
    %7 = arith.addf %4, %6 : vector<4x256xf32>
    %cst = arith.constant 0.000000e+00 : f32
    %8 = vector.broadcast %cst : f32 to vector<4x256xf32>
    %9 = arith.maximumf %7, %8 : vector<4x256xf32>
    %c0_6 = arith.constant 0 : index
    %c0_7 = arith.constant 0 : index
    %10 = vector.load %arg4[%c0_6, %c0_7] : memref<4x4xf32, #tpu.memory_space<vmem>>, vector<4x4xf32>
    %cst_8 = arith.constant dense<0.000000e+00> : vector<4x256xf32>
    %11 = tpu.matmul %10, %9, %cst_8 {dimension_numbers = #tpu.dot_dimension_numbers<[1], [0], [0], [1], [0, 0, 1, 1], [], []>} : vector<4x4xf32>, vector<4x256xf32>, vector<4x256xf32> -> vector<4x256xf32>
    %c0_9 = arith.constant 0 : index
    %c0_10 = arith.constant 0 : index
    %12 = vector.load %arg5[%c0_9, %c0_10] : memref<4x1xf32, #tpu.memory_space<vmem>>, vector<4x1xf32>
    %13 = vector.broadcast %12 : vector<4x1xf32> to vector<4x256xf32>
    %14 = arith.addf %11, %13 : vector<4x256xf32>
    %15 = arith.truncf %14 : vector<4x256xf32> to vector<4x256xbf16>
    %c0_11 = arith.constant 0 : index
    %c0_12 = arith.constant 0 : index
    %c0_13 = arith.constant 0 : index
    %16 = vector.load %arg7[%c0_11, %c0_12, %c0_13] : memref<1x4x256xbf16, #tpu.memory_space<vmem>>, vector<1x4x256xbf16>
    %17 = vector.shape_cast %16 : vector<1x4x256xbf16> to vector<4x256xbf16>
    %18 = vector.shape_cast %15 : vector<4x256xbf16> to vector<1x4x256xbf16>
    tpu.vector_store %arg7[%c0_11, %c0_12, %c0_13], %18 {strides = array<i32>} : memref<1x4x256xbf16, #tpu.memory_space<vmem>>, vector<1x4x256xbf16>,
    %c0_i32 = arith.constant 0 : i32
    %19 = arith.cmpi eq, %arg1, %c0_i32 : i32
    %20 = arith.extui %19 : i1 to i32
    %c0_i32_14 = arith.constant 0 : i32
    %21 = arith.cmpi ne, %20, %c0_i32_14 : i32
    scf.if %21 {
      %cst_29 = arith.constant 0.000000e+00 : f32
      %39 = vector.broadcast %cst_29 : f32 to vector<4x1xf32>
      %c0_30 = arith.constant 0 : index
      %c0_31 = arith.constant 0 : index
      %c0_32 = arith.constant 0 : index
      %40 = vector.load %arg8[%c0_30, %c0_31, %c0_32] : memref<1x4x1xf32, #tpu.memory_space<vmem>>, vector<1x4x1xf32>
      %41 = vector.shape_cast %40 : vector<1x4x1xf32> to vector<4x1xf32>
      %42 = vector.shape_cast %39 : vector<4x1xf32> to vector<1x4x1xf32>
      tpu.vector_store %arg8[%c0_30, %c0_31, %c0_32], %42 {strides = array<i32>} : memref<1x4x1xf32, #tpu.memory_space<vmem>>, vector<1x4x1xf32>,
      %cst_33 = arith.constant 0.000000e+00 : f32
      %43 = vector.broadcast %cst_33 : f32 to vector<4x1xf32>
      %c0_34 = arith.constant 0 : index
      %c0_35 = arith.constant 0 : index
      %c0_36 = arith.constant 0 : index
      %44 = vector.load %arg9[%c0_34, %c0_35, %c0_36] : memref<1x4x1xf32, #tpu.memory_space<vmem>>, vector<1x4x1xf32>
      %45 = vector.shape_cast %44 : vector<1x4x1xf32> to vector<4x1xf32>
      %46 = vector.shape_cast %43 : vector<4x1xf32> to vector<1x4x1xf32>
      tpu.vector_store %arg9[%c0_34, %c0_35, %c0_36], %46 {strides = array<i32>} : memref<1x4x1xf32, #tpu.memory_space<vmem>>, vector<1x4x1xf32>,
    } else {
    }
    %c0_15 = arith.constant 0 : index
    %c0_16 = arith.constant 0 : index
    %c0_17 = arith.constant 0 : index
    %22 = vector.load %arg8[%c0_15, %c0_16, %c0_17] : memref<1x4x1xf32, #tpu.memory_space<vmem>>, vector<1x4x1xf32>
    %23 = vector.shape_cast %22 : vector<1x4x1xf32> to vector<4x1xf32>
    %cst_18 = arith.constant dense<0.000000e+00> : vector<4xf32>
    %24 = vector.multi_reduction <add>, %14, %cst_18 [1] : vector<4x256xf32> to vector<4xf32>
    %25 = vector.shape_cast %24 : vector<4xf32> to vector<4x1xf32>
    %26 = arith.addf %23, %25 : vector<4x1xf32>
    %c0_19 = arith.constant 0 : index
    %c0_20 = arith.constant 0 : index
    %c0_21 = arith.constant 0 : index
    %27 = vector.load %arg8[%c0_19, %c0_20, %c0_21] : memref<1x4x1xf32, #tpu.memory_space<vmem>>, vector<1x4x1xf32>
    %28 = vector.shape_cast %27 : vector<1x4x1xf32> to vector<4x1xf32>
    %29 = vector.shape_cast %26 : vector<4x1xf32> to vector<1x4x1xf32>
    tpu.vector_store %arg8[%c0_19, %c0_20, %c0_21], %29 {strides = array<i32>} : memref<1x4x1xf32, #tpu.memory_space<vmem>>, vector<1x4x1xf32>,
    %c0_22 = arith.constant 0 : index
    %c0_23 = arith.constant 0 : index
    %c0_24 = arith.constant 0 : index
    %30 = vector.load %arg9[%c0_22, %c0_23, %c0_24] : memref<1x4x1xf32, #tpu.memory_space<vmem>>, vector<1x4x1xf32>
    %31 = vector.shape_cast %30 : vector<1x4x1xf32> to vector<4x1xf32>
    %32 = arith.mulf %14, %14 : vector<4x256xf32>
    %cst_25 = arith.constant dense<0.000000e+00> : vector<4xf32>
    %33 = vector.multi_reduction <add>, %32, %cst_25 [1] : vector<4x256xf32> to vector<4xf32>
    %34 = vector.shape_cast %33 : vector<4xf32> to vector<4x1xf32>
    %35 = arith.addf %31, %34 : vector<4x1xf32>
    %c0_26 = arith.constant 0 : index
    %c0_27 = arith.constant 0 : index
    %c0_28 = arith.constant 0 : index
    %36 = vector.load %arg9[%c0_26, %c0_27, %c0_28] : memref<1x4x1xf32, #tpu.memory_space<vmem>>, vector<1x4x1xf32>
    %37 = vector.shape_cast %36 : vector<1x4x1xf32> to vector<4x1xf32>
    %38 = vector.shape_cast %35 : vector<4x1xf32> to vector<1x4x1xf32>
    tpu.vector_store %arg9[%c0_26, %c0_27, %c0_28], %38 {strides = array<i32>} : memref<1x4x1xf32, #tpu.memory_space<vmem>>, vector<1x4x1xf32>,
    return
  }
  func.func @transform_0(%arg0: i32, %arg1: i32) -> (i32, i32) {
    %c0_i32 = arith.constant 0 : i32
    %c0_i32_0 = arith.constant 0 : i32
    %c0_i32_1 = arith.constant 0 : i32
    return %c0_i32, %c0_i32_0 : i32, i32
  }
  func.func @transform_1(%arg0: i32, %arg1: i32) -> (i32, i32) {
    %c0_i32 = arith.constant 0 : i32
    %c0_i32_0 = arith.constant 0 : i32
    %c0_i32_1 = arith.constant 0 : i32
    return %c0_i32, %c0_i32_0 : i32, i32
  }
  func.func @transform_2(%arg0: i32, %arg1: i32) -> (i32, i32) {
    %c0_i32 = arith.constant 0 : i32
    %c0_i32_0 = arith.constant 0 : i32
    %c0_i32_1 = arith.constant 0 : i32
    return %c0_i32, %c0_i32_0 : i32, i32
  }
  func.func @transform_3(%arg0: i32, %arg1: i32) -> (i32, i32) {
    %c0_i32 = arith.constant 0 : i32
    %c0_i32_0 = arith.constant 0 : i32
    %c0_i32_1 = arith.constant 0 : i32
    return %c0_i32, %c0_i32_0 : i32, i32
  }
  func.func @transform_4(%arg0: i32, %arg1: i32) -> (i32, i32, i32) {
    %c0_i32 = arith.constant 0 : i32
    %c0_i32_0 = arith.constant 0 : i32
    return %arg0, %c0_i32, %arg1 : i32, i32, i32
  }
  func.func @transform_5(%arg0: i32, %arg1: i32) -> (i32, i32, i32) {
    %c0_i32 = arith.constant 0 : i32
    %c0_i32_0 = arith.constant 0 : i32
    return %arg0, %c0_i32, %arg1 : i32, i32, i32
  }
  func.func @transform_6(%arg0: i32, %arg1: i32) -> (i32, i32, i32) {
    %c0_i32 = arith.constant 0 : i32
    %c0_i32_0 = arith.constant 0 : i32
    %c0_i32_1 = arith.constant 0 : i32
    return %arg0, %c0_i32, %c0_i32_0 : i32, i32, i32
  }
  func.func @transform_7(%arg0: i32, %arg1: i32) -> (i32, i32, i32) {
    %c0_i32 = arith.constant 0 : i32
    %c0_i32_0 = arith.constant 0 : i32
    %c0_i32_1 = arith.constant 0 : i32
    return %arg0, %c0_i32, %c0_i32_0 : i32, i32, i32
  }
}

module attributes {stable_mosaic.version = 11 : i64} {
  func.func @_block_apply_kernel(%arg0: i32, %arg1: i32, %arg2: memref<4x1xf32, #tpu.memory_space<vmem>>, %arg3: memref<4x1xf32, #tpu.memory_space<vmem>>, %arg4: memref<4x4xf32, #tpu.memory_space<vmem>>, %arg5: memref<4x1xf32, #tpu.memory_space<vmem>>, %arg6: memref<1x4x256xbf16, #tpu.memory_space<vmem>>, %arg7: memref<1x4x256xbf16, #tpu.memory_space<vmem>>, %arg8: memref<1x4x1xf32, #tpu.memory_space<vmem>>, %arg9: memref<1x4x1xf32, #tpu.memory_space<vmem>>) attributes {dimension_semantics = [#tpu.dimension_semantics<parallel>, #tpu.dimension_semantics<arbitrary>], iteration_bounds = array<i64: 2, 1>, scalar_prefetch = 0 : i64, scratch_operands = 0 : i64, tpu.core_type = #tpu.core_type<tc>, window_params = [{pipeline_mode = #tpu.pipeline_mode<synchronous>, transform_indices = @transform_0, window_bounds = array<i64: 4, 1>}, {pipeline_mode = #tpu.pipeline_mode<synchronous>, transform_indices = @transform_1, window_bounds = array<i64: 4, 1>}, {pipeline_mode = #tpu.pipeline_mode<synchronous>, transform_indices = @transform_2, window_bounds = array<i64: 4, 4>}, {pipeline_mode = #tpu.pipeline_mode<synchronous>, transform_indices = @transform_3, window_bounds = array<i64: 4, 1>}, {transform_indices = @transform_4, window_bounds = array<i64: 1, 4, 256>}, {transform_indices = @transform_5, window_bounds = array<i64: 1, 4, 256>}, {transform_indices = @transform_6, window_bounds = array<i64: 1, 4, 1>}, {transform_indices = @transform_7, window_bounds = array<i64: 1, 4, 1>}]} {
    %c0 = arith.constant 0 : index
    %c0_0 = arith.constant 0 : index
    %c0_1 = arith.constant 0 : index
    %0 = vector.load %arg6[%c0, %c0_0, %c0_1] : memref<1x4x256xbf16, #tpu.memory_space<vmem>>, vector<1x4x256xbf16>
    %1 = vector.shape_cast %0 : vector<1x4x256xbf16> to vector<4x256xbf16>
    %2 = arith.extf %1 : vector<4x256xbf16> to vector<4x256xf32>
    %c0_2 = arith.constant 0 : index
    %c0_3 = arith.constant 0 : index
    %3 = vector.load %arg2[%c0_2, %c0_3] : memref<4x1xf32, #tpu.memory_space<vmem>>, vector<4x1xf32>
    %4 = vector.broadcast %3 : vector<4x1xf32> to vector<4x256xf32>
    %5 = arith.mulf %2, %4 : vector<4x256xf32>
    %c0_4 = arith.constant 0 : index
    %c0_5 = arith.constant 0 : index
    %6 = vector.load %arg3[%c0_4, %c0_5] : memref<4x1xf32, #tpu.memory_space<vmem>>, vector<4x1xf32>
    %7 = vector.broadcast %6 : vector<4x1xf32> to vector<4x256xf32>
    %8 = arith.addf %5, %7 : vector<4x256xf32>
    %cst = arith.constant 0.000000e+00 : f32
    %9 = vector.broadcast %cst : f32 to vector<4x256xf32>
    %10 = arith.maximumf %8, %9 : vector<4x256xf32>
    %c0_6 = arith.constant 0 : index
    %c0_7 = arith.constant 0 : index
    %11 = vector.load %arg4[%c0_6, %c0_7] : memref<4x4xf32, #tpu.memory_space<vmem>>, vector<4x4xf32>
    %cst_8 = arith.constant dense<0.000000e+00> : vector<4x256xf32>
    %12 = tpu.matmul %11, %10, %cst_8 {dimension_numbers = #tpu.dot_dimension_numbers<[1], [0], [0], [1], [0, 0, 1, 1], [], []>} : vector<4x4xf32>, vector<4x256xf32>, vector<4x256xf32> -> vector<4x256xf32>
    %c0_9 = arith.constant 0 : index
    %c0_10 = arith.constant 0 : index
    %13 = vector.load %arg5[%c0_9, %c0_10] : memref<4x1xf32, #tpu.memory_space<vmem>>, vector<4x1xf32>
    %14 = vector.broadcast %13 : vector<4x1xf32> to vector<4x256xf32>
    %15 = arith.addf %12, %14 : vector<4x256xf32>
    %16 = arith.truncf %15 : vector<4x256xf32> to vector<4x256xbf16>
    %c0_11 = arith.constant 0 : index
    %c0_12 = arith.constant 0 : index
    %c0_13 = arith.constant 0 : index
    %17 = vector.load %arg7[%c0_11, %c0_12, %c0_13] : memref<1x4x256xbf16, #tpu.memory_space<vmem>>, vector<1x4x256xbf16>
    %18 = vector.shape_cast %17 : vector<1x4x256xbf16> to vector<4x256xbf16>
    %19 = vector.shape_cast %16 : vector<4x256xbf16> to vector<1x4x256xbf16>
    tpu.vector_store %arg7[%c0_11, %c0_12, %c0_13], %19 {strides = array<i32>} : memref<1x4x256xbf16, #tpu.memory_space<vmem>>, vector<1x4x256xbf16>,
    %c0_i32 = arith.constant 0 : i32
    %20 = arith.cmpi eq, %arg1, %c0_i32 : i32
    %21 = arith.extui %20 : i1 to i32
    %c0_i32_14 = arith.constant 0 : i32
    %22 = arith.cmpi ne, %21, %c0_i32_14 : i32
    scf.if %22 {
      %cst_29 = arith.constant 0.000000e+00 : f32
      %40 = vector.broadcast %cst_29 : f32 to vector<4x1xf32>
      %c0_30 = arith.constant 0 : index
      %c0_31 = arith.constant 0 : index
      %c0_32 = arith.constant 0 : index
      %41 = vector.load %arg8[%c0_30, %c0_31, %c0_32] : memref<1x4x1xf32, #tpu.memory_space<vmem>>, vector<1x4x1xf32>
      %42 = vector.shape_cast %41 : vector<1x4x1xf32> to vector<4x1xf32>
      %43 = vector.shape_cast %40 : vector<4x1xf32> to vector<1x4x1xf32>
      tpu.vector_store %arg8[%c0_30, %c0_31, %c0_32], %43 {strides = array<i32>} : memref<1x4x1xf32, #tpu.memory_space<vmem>>, vector<1x4x1xf32>,
      %cst_33 = arith.constant 0.000000e+00 : f32
      %44 = vector.broadcast %cst_33 : f32 to vector<4x1xf32>
      %c0_34 = arith.constant 0 : index
      %c0_35 = arith.constant 0 : index
      %c0_36 = arith.constant 0 : index
      %45 = vector.load %arg9[%c0_34, %c0_35, %c0_36] : memref<1x4x1xf32, #tpu.memory_space<vmem>>, vector<1x4x1xf32>
      %46 = vector.shape_cast %45 : vector<1x4x1xf32> to vector<4x1xf32>
      %47 = vector.shape_cast %44 : vector<4x1xf32> to vector<1x4x1xf32>
      tpu.vector_store %arg9[%c0_34, %c0_35, %c0_36], %47 {strides = array<i32>} : memref<1x4x1xf32, #tpu.memory_space<vmem>>, vector<1x4x1xf32>,
    } else {
    }
    %c0_15 = arith.constant 0 : index
    %c0_16 = arith.constant 0 : index
    %c0_17 = arith.constant 0 : index
    %23 = vector.load %arg8[%c0_15, %c0_16, %c0_17] : memref<1x4x1xf32, #tpu.memory_space<vmem>>, vector<1x4x1xf32>
    %24 = vector.shape_cast %23 : vector<1x4x1xf32> to vector<4x1xf32>
    %cst_18 = arith.constant dense<0.000000e+00> : vector<4xf32>
    %25 = vector.multi_reduction <add>, %15, %cst_18 [1] : vector<4x256xf32> to vector<4xf32>
    %26 = vector.shape_cast %25 : vector<4xf32> to vector<4x1xf32>
    %27 = arith.addf %24, %26 : vector<4x1xf32>
    %c0_19 = arith.constant 0 : index
    %c0_20 = arith.constant 0 : index
    %c0_21 = arith.constant 0 : index
    %28 = vector.load %arg8[%c0_19, %c0_20, %c0_21] : memref<1x4x1xf32, #tpu.memory_space<vmem>>, vector<1x4x1xf32>
    %29 = vector.shape_cast %28 : vector<1x4x1xf32> to vector<4x1xf32>
    %30 = vector.shape_cast %27 : vector<4x1xf32> to vector<1x4x1xf32>
    tpu.vector_store %arg8[%c0_19, %c0_20, %c0_21], %30 {strides = array<i32>} : memref<1x4x1xf32, #tpu.memory_space<vmem>>, vector<1x4x1xf32>,
    %c0_22 = arith.constant 0 : index
    %c0_23 = arith.constant 0 : index
    %c0_24 = arith.constant 0 : index
    %31 = vector.load %arg9[%c0_22, %c0_23, %c0_24] : memref<1x4x1xf32, #tpu.memory_space<vmem>>, vector<1x4x1xf32>
    %32 = vector.shape_cast %31 : vector<1x4x1xf32> to vector<4x1xf32>
    %33 = arith.mulf %15, %15 : vector<4x256xf32>
    %cst_25 = arith.constant dense<0.000000e+00> : vector<4xf32>
    %34 = vector.multi_reduction <add>, %33, %cst_25 [1] : vector<4x256xf32> to vector<4xf32>
    %35 = vector.shape_cast %34 : vector<4xf32> to vector<4x1xf32>
    %36 = arith.addf %32, %35 : vector<4x1xf32>
    %c0_26 = arith.constant 0 : index
    %c0_27 = arith.constant 0 : index
    %c0_28 = arith.constant 0 : index
    %37 = vector.load %arg9[%c0_26, %c0_27, %c0_28] : memref<1x4x1xf32, #tpu.memory_space<vmem>>, vector<1x4x1xf32>
    %38 = vector.shape_cast %37 : vector<1x4x1xf32> to vector<4x1xf32>
    %39 = vector.shape_cast %36 : vector<4x1xf32> to vector<1x4x1xf32>
    tpu.vector_store %arg9[%c0_26, %c0_27, %c0_28], %39 {strides = array<i32>} : memref<1x4x1xf32, #tpu.memory_space<vmem>>, vector<1x4x1xf32>,
    return
  }
  func.func @transform_0(%arg0: i32, %arg1: i32) -> (i32, i32) {
    %c0_i32 = arith.constant 0 : i32
    %c0_i32_0 = arith.constant 0 : i32
    %c0_i32_1 = arith.constant 0 : i32
    return %c0_i32, %c0_i32_0 : i32, i32
  }
  func.func @transform_1(%arg0: i32, %arg1: i32) -> (i32, i32) {
    %c0_i32 = arith.constant 0 : i32
    %c0_i32_0 = arith.constant 0 : i32
    %c0_i32_1 = arith.constant 0 : i32
    return %c0_i32, %c0_i32_0 : i32, i32
  }
  func.func @transform_2(%arg0: i32, %arg1: i32) -> (i32, i32) {
    %c0_i32 = arith.constant 0 : i32
    %c0_i32_0 = arith.constant 0 : i32
    %c0_i32_1 = arith.constant 0 : i32
    return %c0_i32, %c0_i32_0 : i32, i32
  }
  func.func @transform_3(%arg0: i32, %arg1: i32) -> (i32, i32) {
    %c0_i32 = arith.constant 0 : i32
    %c0_i32_0 = arith.constant 0 : i32
    %c0_i32_1 = arith.constant 0 : i32
    return %c0_i32, %c0_i32_0 : i32, i32
  }
  func.func @transform_4(%arg0: i32, %arg1: i32) -> (i32, i32, i32) {
    %c0_i32 = arith.constant 0 : i32
    %c0_i32_0 = arith.constant 0 : i32
    return %arg0, %c0_i32, %arg1 : i32, i32, i32
  }
  func.func @transform_5(%arg0: i32, %arg1: i32) -> (i32, i32, i32) {
    %c0_i32 = arith.constant 0 : i32
    %c0_i32_0 = arith.constant 0 : i32
    return %arg0, %c0_i32, %arg1 : i32, i32, i32
  }
  func.func @transform_6(%arg0: i32, %arg1: i32) -> (i32, i32, i32) {
    %c0_i32 = arith.constant 0 : i32
    %c0_i32_0 = arith.constant 0 : i32
    %c0_i32_1 = arith.constant 0 : i32
    return %arg0, %c0_i32, %c0_i32_0 : i32, i32, i32
  }
  func.func @transform_7(%arg0: i32, %arg1: i32) -> (i32, i32, i32) {
    %c0_i32 = arith.constant 0 : i32
    %c0_i32_0 = arith.constant 0 : i32
    %c0_i32_1 = arith.constant 0 : i32
    return %arg0, %c0_i32, %c0_i32_0 : i32, i32, i32
  }
}

module attributes {stable_mosaic.version = 11 : i64} {
  func.func @_combine_kernel_shared(%arg0: i32, %arg1: i32, %arg2: memref<4x4xf32, #tpu.memory_space<vmem>>, %arg3: memref<4x1xf32, #tpu.memory_space<vmem>>, %arg4: memref<1x4x1xf32, #tpu.memory_space<vmem>>, %arg5: memref<1x4x256xf32, #tpu.memory_space<vmem>>, %arg6: memref<1x4x256xbf16, #tpu.memory_space<vmem>>, %arg7: memref<1x4x256xf32, #tpu.memory_space<vmem>>) attributes {dimension_semantics = [#tpu.dimension_semantics<parallel>, #tpu.dimension_semantics<parallel>], iteration_bounds = array<i64: 2, 1>, scalar_prefetch = 0 : i64, scratch_operands = 0 : i64, tpu.core_type = #tpu.core_type<tc>, window_params = [{pipeline_mode = #tpu.pipeline_mode<synchronous>, transform_indices = @transform_0, window_bounds = array<i64: 4, 4>}, {pipeline_mode = #tpu.pipeline_mode<synchronous>, transform_indices = @transform_1, window_bounds = array<i64: 4, 1>}, {transform_indices = @transform_2, window_bounds = array<i64: 1, 4, 1>}, {transform_indices = @transform_3, window_bounds = array<i64: 1, 4, 256>}, {transform_indices = @transform_4, window_bounds = array<i64: 1, 4, 256>}, {transform_indices = @transform_5, window_bounds = array<i64: 1, 4, 256>}]} {
    %c0 = arith.constant 0 : index
    %c0_0 = arith.constant 0 : index
    %c0_1 = arith.constant 0 : index
    %0 = vector.load %arg5[%c0, %c0_0, %c0_1] : memref<1x4x256xf32, #tpu.memory_space<vmem>>, vector<1x4x256xf32>
    %1 = vector.shape_cast %0 : vector<1x4x256xf32> to vector<4x256xf32>
    %c0_2 = arith.constant 0 : index
    %c0_3 = arith.constant 0 : index
    %2 = vector.load %arg2[%c0_2, %c0_3] : memref<4x4xf32, #tpu.memory_space<vmem>>, vector<4x4xf32>
    %cst = arith.constant dense<0.000000e+00> : vector<4x256xf32>
    %3 = tpu.matmul %2, %1, %cst {dimension_numbers = #tpu.dot_dimension_numbers<[1], [0], [0], [1], [0, 0, 1, 1], [], []>} : vector<4x4xf32>, vector<4x256xf32>, vector<4x256xf32> -> vector<4x256xf32>
    %c0_4 = arith.constant 0 : index
    %c0_5 = arith.constant 0 : index
    %4 = vector.load %arg3[%c0_4, %c0_5] : memref<4x1xf32, #tpu.memory_space<vmem>>, vector<4x1xf32>
    %5 = vector.broadcast %4 : vector<4x1xf32> to vector<4x256xf32>
    %6 = arith.addf %3, %5 : vector<4x256xf32>
    %c0_6 = arith.constant 0 : index
    %c0_7 = arith.constant 0 : index
    %c0_8 = arith.constant 0 : index
    %7 = vector.load %arg6[%c0_6, %c0_7, %c0_8] : memref<1x4x256xbf16, #tpu.memory_space<vmem>>, vector<1x4x256xbf16>
    %8 = vector.shape_cast %7 : vector<1x4x256xbf16> to vector<4x256xbf16>
    %9 = arith.extf %8 : vector<4x256xbf16> to vector<4x256xf32>
    %c0_9 = arith.constant 0 : index
    %c0_10 = arith.constant 0 : index
    %c0_11 = arith.constant 0 : index
    %10 = vector.load %arg4[%c0_9, %c0_10, %c0_11] : memref<1x4x1xf32, #tpu.memory_space<vmem>>, vector<1x4x1xf32>
    %11 = vector.shape_cast %10 : vector<1x4x1xf32> to vector<4x1xf32>
    %12 = vector.broadcast %11 : vector<4x1xf32> to vector<4x256xf32>
    %13 = arith.mulf %9, %12 : vector<4x256xf32>
    %14 = arith.addf %1, %13 : vector<4x256xf32>
    %15 = arith.addf %14, %6 : vector<4x256xf32>
    %c0_12 = arith.constant 0 : index
    %c0_13 = arith.constant 0 : index
    %c0_14 = arith.constant 0 : index
    %16 = vector.load %arg7[%c0_12, %c0_13, %c0_14] : memref<1x4x256xf32, #tpu.memory_space<vmem>>, vector<1x4x256xf32>
    %17 = vector.shape_cast %16 : vector<1x4x256xf32> to vector<4x256xf32>
    %18 = vector.shape_cast %15 : vector<4x256xf32> to vector<1x4x256xf32>
    tpu.vector_store %arg7[%c0_12, %c0_13, %c0_14], %18 {strides = array<i32>} : memref<1x4x256xf32, #tpu.memory_space<vmem>>, vector<1x4x256xf32>,
    return
  }
  func.func @transform_0(%arg0: i32, %arg1: i32) -> (i32, i32) {
    %c0_i32 = arith.constant 0 : i32
    %c0_i32_0 = arith.constant 0 : i32
    %c0_i32_1 = arith.constant 0 : i32
    return %c0_i32, %c0_i32_0 : i32, i32
  }
  func.func @transform_1(%arg0: i32, %arg1: i32) -> (i32, i32) {
    %c0_i32 = arith.constant 0 : i32
    %c0_i32_0 = arith.constant 0 : i32
    %c0_i32_1 = arith.constant 0 : i32
    return %c0_i32, %c0_i32_0 : i32, i32
  }
  func.func @transform_2(%arg0: i32, %arg1: i32) -> (i32, i32, i32) {
    %c0_i32 = arith.constant 0 : i32
    %c0_i32_0 = arith.constant 0 : i32
    %c0_i32_1 = arith.constant 0 : i32
    return %arg0, %c0_i32, %c0_i32_0 : i32, i32, i32
  }
  func.func @transform_3(%arg0: i32, %arg1: i32) -> (i32, i32, i32) {
    %c0_i32 = arith.constant 0 : i32
    %c0_i32_0 = arith.constant 0 : i32
    return %arg0, %c0_i32, %arg1 : i32, i32, i32
  }
  func.func @transform_4(%arg0: i32, %arg1: i32) -> (i32, i32, i32) {
    %c0_i32 = arith.constant 0 : i32
    %c0_i32_0 = arith.constant 0 : i32
    return %arg0, %c0_i32, %arg1 : i32, i32, i32
  }
  func.func @transform_5(%arg0: i32, %arg1: i32) -> (i32, i32, i32) {
    %c0_i32 = arith.constant 0 : i32
    %c0_i32_0 = arith.constant 0 : i32
    return %arg0, %c0_i32, %arg1 : i32, i32, i32
  }
}

</mosaic_0001>

<bundles_post_ra>
// kernel: _lambda_.4
= control target key start
LH: loop header
LB: loop body
LE: loop exit
PB: predicated region body
PF: predicated region fallthrough
CT: control target
= control target key end

     0   :  { %s390_s9 = smov 0   ;;  %s392_s10 = smov 0   ;;  %s430_s0 = inlined_call_operand.vmem [shape: f32[2,4,256], index: 0, kind: input, shape index: {}]   ;;  %s431_s1 = inlined_call_operand.vmem [shape: f32[2,4,1], index: 1, kind: output, shape index: {0}]   ;;  %s432_s2 = inlined_call_operand.vmem [shape: f32[2,4,1], index: 2, kind: output, shape index: {1}]  }
   0x1   :  { %s394_s11 = smov 0  }
   0x2 LB: > { %s25_s12 = sadd.s32 1, %s368_s10  ;;  %p316_p0 = scmp.ge.s32.totalorder %s372_s11, 1  ;;  %s372_s11 = sphi %s394_s11, %s13_s11   ;;  %s368_s10 = sphi %s392_s10, %s434_s10   ;;  %s364_s9 = sphi %s390_s9, %s433_s9  }
   0x3   : > { %p27_p1 = scmp.ge.s32.totalorder %s25_s12, 2  ;;  %p134_p2 = scmp.lt.s32.totalorder %s372_s11, 3 }
   0x5   : > { %s436_s12 = smov (%p27_p1, %s25_s12), 0  ;;  %p135_p3 = pnand %p316_p0, %p134_p2 }
   0x6   : > { %p164_p4 = scmp.lt.s32.totalorder (!%p135_p3), %s364_s9, 1  ;;  %vm186_vm0 = vcmask (!%p135_p3), 3072   ;;  %vm193_vm1 = vcmask (!%p135_p3), 1043456   ;;  %v374_v1 = vmov (!%p135_p3), 0.0  }
   0x7   : > { %138 = sbr.rel (%p135_p3) target bundleno = 172 (0xac), region = 24 }
   0xe   : > { %s438_s9 = smov (!%p164_p4, %s364_s9), 1 }
   0xf   : > { %s323_s13 = sshll.u32 %s438_s9, 3  ;;  %s319_s14 = sshll.u32 %s438_s9, 2 }
  0x10   : > { %s171_s17 = scalar_lea.vmem %s430_s0, %s323_s13  ;;  %s176_s20 = scalar_lea.vmem %s431_s1, %s319_s14 }
  0x11   : > { %v181_v0 = vld [vmem:[%s171_s17] sm:$0xff]  ;;  %187 = vst.msk [vmem:[%s176_s20] sm:$0xf] %vm186_vm0, %v374_v1  ;;  %s180_s23 = scalar_lea.vmem %s432_s2, %s319_s14 }
  0x12   : > { %v191_v2 = vcombine.high %v181_v0, %v181_v0  ;;  %v194_v3 = vsel %vm193_vm1, %v181_v0, 0.0  ;;  %v203_v4 = vmul.f32 %v181_v0, %v181_v0  ;;  %188 = vst.msk [vmem:[%s180_s23] sm:$0xf] %vm186_vm0, %v374_v1 }
  0x14   : > { %v195_v5 = vsel %vm193_vm1, %v191_v2, 0.0  ;;  %v205_v6 = vcombine.high %v203_v4, %v203_v4  ;;  %v207_v7 = vsel %vm193_vm1, %v203_v4, 0.0 }
  0x15   : > { %v196_v8 = vadd.f32 %v195_v5, %v194_v3 }
  0x16   : > { %v208_v9 = vsel %vm193_vm1, %v205_v6, 0.0 }
  0x17   : > { %197 = vadd.xlane.f32.xlu0 %v196_v8  ;;  %v209_v10 = vadd.f32 %v208_v9, %v207_v7 }
  0x18   : > { %v189_v11 = vld [vmem:[%s176_s20] sm:$0xf] }
  0x19   : > { %v202_v14 = vld [vmem:[%s180_s23] sm:$0xf] }
  0x1b   : > { %210 = vadd.xlane.f32.xlu0 %v209_v10 }
  0xa4   : > { %v198_v12 = vpop.xlane.xlu0 %197 }
  0xa5   : > { %v199_v13 = vadd.f32 %v198_v12, %v189_v11 }
  0xa7   : > { %201 = vst.msk [vmem:[%s176_s20] sm:$0xf] %vm186_vm0, %v199_v13 }
  0xa8   : > { %v211_v15 = vpop.xlane.xlu0 %210 }
  0xa9   : > { %v212_v16 = vadd.f32 %v211_v15, %v202_v14 }
  0xab   : > { %213 = vst.msk [vmem:[%s180_s23] sm:$0xf] %vm186_vm0, %v212_v16 }
  0xac PF: > { %s13_s11 = sadd.s32 1, %s372_s11   ;;  %s433_s9 = smov %s368_s10 }
  0xad   : > { %p10_p5 = scmp.ge.s32.totalorder %s13_s11, 4   ;;  %s434_s10 = smov %s436_s12 }
  0xaf   :  { %12 = sbr.rel (!%p10_p5) target bundleno = 2 (0x2), region = 70 }

// kernel: _lambda_.5
= control target key start
LH: loop header
LB: loop body
LE: loop exit
PB: predicated region body
PF: predicated region fallthrough
CT: control target
= control target key end

     0   :  { %s763_s24 = smov 0   ;;  %s765_s25 = smov 0   ;;  %s824_s0 = inlined_call_operand.vmem [shape: f32[4,1], index: 0, kind: input, shape index: {}]   ;;  %s825_s1 = inlined_call_operand.vmem [shape: f32[4,1], index: 1, kind: input, shape index: {}]   ;;  %s826_s2 = inlined_call_operand.vmem [shape: f32[4,4], index: 2, kind: input, shape index: {}]   ;;  %s827_s3 = inlined_call_operand.vmem [shape: f32[4,1], index: 3, kind: input, shape index: {}]   ;;  %s828_s4 = inlined_call_operand.vmem [shape: f32[2,4,256], index: 4, kind: input, shape index: {}]   ;;  %s829_s5 = inlined_call_operand.vmem [shape: bf16[2,4,256], index: 5, kind: output, shape index: {0}]   ;;  %s830_s6 = inlined_call_operand.vmem [shape: f32[2,4,1], index: 6, kind: output, shape index: {1}]   ;;  %s831_s7 = inlined_call_operand.vmem [shape: f32[2,4,1], index: 7, kind: output, shape index: {2}]  }
   0x1   :  { %s767_s26 = smov 0  }
   0x2 LB: > { %s30_s27 = sadd.s32 1, %s714_s25  ;;  %p651_p0 = scmp.ge.s32.totalorder %s718_s26, 1  ;;  %s718_s26 = sphi %s767_s26, %s18_s26   ;;  %s714_s25 = sphi %s765_s25, %s833_s25   ;;  %s710_s24 = sphi %s763_s24, %s832_s24  }
   0x3   : > { %p32_p1 = scmp.ge.s32.totalorder %s30_s27, 2  ;;  %p263_p2 = scmp.lt.s32.totalorder %s718_s26, 3 }
   0x5   : > { %s835_s27 = smov (%p32_p1, %s30_s27), 0  ;;  %p264_p3 = pnand %p651_p0, %p263_p2 }
   0x6   : > { %v340_v0 = vld [vmem:[%s824_s0] sm:$0xf] (!%p264_p3)  ;;  %v720_v1 = vmov (!%p264_p3), 0   ;;  %v721_v3 = vmov (!%p264_p3), 0.0   ;;  %p312_p4 = scmp.lt.s32.totalorder (!%p264_p3), %s710_s24, 1  ;;  %v348_v7 = vlaneseq (!%p264_p3)  ;;  %vm382_vm0 = vcmask (!%p264_p3), 1043456  }
   0x7   : > { %267 = sbr.rel (%p264_p3) target bundleno = 515 (0x203), region = 40  ;;  %694 = vset.pattern.permute.xlu0 (!%p264_p3), %v720_v1  ;;  %695 = vset.pattern.permute.xlu1 (!%p264_p3), %v720_v1  ;;  %v354_v2 = vld [vmem:[%s825_s1] sm:$0xf] (!%p264_p3)  ;;  %v722_v5 = vmov (!%p264_p3), 839922192   ;;  %vm378_vm1 = vcmask (!%p264_p3), 31744  }
   0x8   : > { %343 = vperm.xlu0 (!%p264_p3), %694, %v340_v0   ;;  %451 = vmatprep.mubr.f32.mxu0 (!%p264_p3), %v721_v3  ;;  %v370_v4 = vld [vmem:[%s827_s3] sm:$0xf] (!%p264_p3)  ;;  %v346_v6 = vunpack.c.l.s4 (!%p264_p3), %v722_v5  ;;  %v349_v9 = vshrl.u32 (!%p264_p3), %v348_v7, 7  ;;  %vm476_vm2 = vcmask (!%p264_p3), 3072  }
   0x9   : > { %373 = vperm.xlu1 (!%p264_p3), %695, %v370_v4   ;;  %v369_v20 = vld [vmem:[%s826_s2] sm:$0xf] (!%p264_p3) }
   0xa   : > { %v347_v8 = vunpack.c.0.s8 (!%p264_p3), %v346_v6 }
   0xc   : > { %357 = vperm.xlu0 (!%p264_p3), %694, %v354_v2   ;;  %v350_v10 = vsub.s32 (!%p264_p3), %v347_v8, %v349_v9 }
   0xe   : > { %s837_s24 = smov (!%p312_p4, %s710_s24), 1 }
   0xf   : > { %s665_s11 = sshll.u32 %s837_s24, 3  ;;  %s666_s17 = sshll.u32 %s837_s24, 2 }
  0x10   : > { %s319_s14 = scalar_lea.vmem %s828_s4, %s665_s11  ;;  %s334_s20 = scalar_lea.vmem %s830_s6, %s666_s17 }
  0x11   : > { %v339_v13 = vld [vmem:[%s319_s14] sm:$0xff]  ;;  %477 = vst.msk [vmem:[%s334_s20] sm:$0xf] %vm476_vm2, %v721_v3  ;;  %s329_s23 = scalar_lea.vmem %s829_s5, %s666_s17  ;;  %s338_s29 = scalar_lea.vmem %s831_s7, %s666_s17 }
  0x12   : > { %478 = vst.msk [vmem:[%s338_s29] sm:$0xf] %vm476_vm2, %v721_v3 }
  0x18   : > { %v479_v35 = vld [vmem:[%s334_s20] sm:$0xf] }
  0x19   : > { %v488_v37 = vld [vmem:[%s338_s29] sm:$0xf] }
  0x87   : > { %v344_v11 = vpop.permute.xlu0 %343 }
  0x88   : > { %v351_v12 = vrot.slane %v344_v11, %v350_v10  ;;  %v374_v21 = vpop.permute.xlu1 %373 }
  0x8a   : > { %v353_v15 = vmul.f32 %v351_v12, %v339_v13 }
  0x8b   : > { %v358_v14 = vpop.permute.xlu0 %357 }
  0x8c   : > { %v365_v16 = vrot.slane %v358_v14, %v350_v10 }
  0x8e   : > { %v367_v17 = vadd.f32 %v365_v16, %v353_v15 }
  0x90   : > { %v368_v18 = vmax.f32 %v367_v17, 0.0 }
  0x92   : > { %v377_v19 = vcombine.high %v368_v18, %v368_v18 }
  0x94   : > { %658 = vmatprep.subr.msk.mxu0 %vm382_vm0, %v377_v19 }
  0x95   : > { %659 = vmatpush1.msk.msra.mxu0 %vm382_vm0, %v368_v18 }
  0x96   : > { %660 = vmatmul.mubr.msk.f32.vlgmr.msra.gmra.mrb[0].mxu0 %vm378_vm1, %v369_v20 }
 0x169   : > { %v453_v22 = vpop.f32.mrb[0].mxu0 }
 0x16a   : > { %v454_v23 = vadd.f32 %v453_v22, %v374_v21  ;;  %v455_v24 = vpop.f32.mrb[1].mxu0 }
 0x16b   : > { %v456_v25 = vadd.f32 %v455_v24, %v374_v21 }
 0x16c   : > { %v480_v26 = vsel %vm382_vm0, %v454_v23, 0.0  ;;  %v489_v27 = vmul.f32 %v454_v23, %v454_v23 }
 0x16d   : > { %v661_v28 = vpack.c.bf16 %v456_v25, %v454_v23  ;;  %v481_v29 = vsel %vm382_vm0, %v456_v25, 0.0  ;;  %v490_v30 = vmul.f32 %v456_v25, %v456_v25 }
 0x16e   : > { %v482_v31 = vadd.f32 %v481_v29, %v480_v26  ;;  %v491_v32 = vsel %vm382_vm0, %v489_v27, 0.0 }
 0x16f   : > { %v492_v33 = vsel %vm382_vm0, %v490_v30, 0.0  ;;  %662 = vst.sshfl [vmem:[%s329_s23] sm:$0x33 pattern:$0x76325410] %v661_v28 }
 0x170   : > { %483 = vadd.xlane.f32.xlu1 %v482_v31  ;;  %v493_v34 = vadd.f32 %v492_v33, %v491_v32 }
 0x172   : > { %494 = vadd.xlane.f32.xlu0 %v493_v34 }
 0x1fd   : > { %v484_v36 = vpop.xlane.xlu1 %483 }
 0x1fe   : > { %v485_v38 = vadd.f32 %v484_v36, %v479_v35 }
 0x1ff   : > { %v495_v39 = vpop.xlane.xlu0 %494 }
 0x200   : > { %487 = vst.msk [vmem:[%s334_s20] sm:$0xf] %vm476_vm2, %v485_v38  ;;  %v496_v40 = vadd.f32 %v495_v39, %v488_v37 }
 0x202   : > { %497 = vst.msk [vmem:[%s338_s29] sm:$0xf] %vm476_vm2, %v496_v40 }
 0x203 PF: > { %s18_s26 = sadd.s32 1, %s718_s26   ;;  %s832_s24 = smov %s714_s25 }
 0x204   : > { %p15_p5 = scmp.ge.s32.totalorder %s18_s26, 4   ;;  %s833_s25 = smov %s835_s27 }
 0x206   :  { %17 = sbr.rel (!%p15_p5) target bundleno = 2 (0x2), region = 98 }

// kernel: _lambda_.6
= control target key start
LH: loop header
LB: loop body
LE: loop exit
PB: predicated region body
PF: predicated region fallthrough
CT: control target
= control target key end

     0   :  { %13 = vsyncpa [#allocation3], 0  ;;  %s1028_s0 = inlined_call_operand.vmem [shape: f32[4,1], index: 0, kind: input, shape index: {}]   ;;  %s1029_s1 = inlined_call_operand.vmem [shape: f32[4,1], index: 1, kind: input, shape index: {}]   ;;  %s1030_s2 = inlined_call_operand.vmem [shape: f32[4,4], index: 2, kind: input, shape index: {}]   ;;  %s1031_s3 = inlined_call_operand.vmem [shape: f32[4,1], index: 3, kind: input, shape index: {}]   ;;  %s1032_s4 = inlined_call_operand.vmem [shape: bf16[2,4,256], index: 4, kind: input, shape index: {}]   ;;  %s1033_s5 = inlined_call_operand.vmem [shape: bf16[2,4,256], index: 5, kind: output, shape index: {0}]   ;;  %s1034_s6 = inlined_call_operand.vmem [shape: f32[2,4,1], index: 6, kind: output, shape index: {1}]   ;;  %s1035_s7 = inlined_call_operand.hbm [shape: f32[2,4,1], index: 7, kind: output, shape index: {2}]  }
   0x1   :  { %15 = vsyncpa [#allocation3 + $0x1], 0  ;;  %s873_s24 = smov 0   ;;  %s875_s25 = smov 0  }
   0x2   :  { %s877_s26 = smov 0   ;;  %s879_s27 = smov 0  }
   0x3   :  { %s881_s28 = smov 0   ;;  %s883_s29 = smov 0  }
   0x4 LB: > { %s667_s30 = sadd.s32 4294967295, %s827_s29   ;;  %s668_s8 = sadd.s32 4294967294, %s827_s29   ;;  %s827_s29 = sphi %s883_s29, %s21_s29   ;;  %s823_s28 = sphi %s881_s28, %s1042_s28   ;;  %s819_s27 = sphi %s879_s27, %s1041_s27   ;;  %s815_s26 = sphi %s877_s26, %s1040_s26   ;;  %s811_s25 = sphi %s875_s25, %s1039_s25   ;;  %s807_s24 = sphi %s873_s24, %s1038_s24  }
   0x5   : > { %s33_s9 = sadd.s32 1, %s823_s28  ;;  %s206_s10 = sadd.s32 1, %s815_s26 }
   0x6   : > { %p35_p0 = scmp.ge.s32.totalorder %s33_s9, 2  ;;  %p216_p1 = scmp.ne.s32.totalorder %s815_s26, %s811_s25 }
   0x7   : > { %p217_p2 = scmp.eq.s32.totalorder %s667_s30, 1  ;;  %p222_p3 = scmp.ne.s32.totalorder %s811_s25, %s807_s24 }
   0x8   : > { %s1044_s9 = smov (%p35_p0, %s33_s9), 0  ;;  %p223_p5 = scmp.eq.s32.totalorder %s668_s8, 1 }
   0x9   : > { %p913_p4 = por %p217_p2, %p216_p1  ;;  %s203_s12 = ssub.s32 %s823_s28, %s1044_s9 }
   0xa   : > { %p671_p6 = scmp.ge.s32.totalorder %s827_s29, 1  ;;  %p204_p7 = scmp.eq.s32.totalorder %s203_s12, 0 }
   0xb   : > { %p920_p8 = por %p223_p5, %p222_p3  ;;  %p266_p9 = scmp.lt.s32.totalorder %s827_s29, 3 }
   0xc   : > { %s926_s14 = scalar_select %p204_p7, %s815_s26, %s206_s10  }
   0xd   : > { %p267_p10 = pnand %p671_p6, %p266_p9 }
   0xe   : > { %v341_v0 = vld [vmem:[%s1028_s0] sm:$0xf] (!%p267_p10)  ;;  %v829_v1 = vmov (!%p267_p10), 0   ;;  %s312_s19 = sand.u32 (!%p267_p10), 1, %s811_s25   ;;  %v830_v3 = vmov (!%p267_p10), 0.0   ;;  %vm477_vm0 = vcmask (!%p267_p10), 3072   ;;  %v349_v7 = vlaneseq (!%p267_p10) }
   0xf   : > { %270 = sbr.rel (%p267_p10) target bundleno = 541 (0x21d), region = 40  ;;  %747 = vset.pattern.permute.xlu0 (!%p267_p10), %v829_v1  ;;  %748 = vset.pattern.permute.xlu1 (!%p267_p10), %v829_v1  ;;  %v355_v2 = vld [vmem:[%s1029_s1] sm:$0xf] (!%p267_p10)  ;;  %s672_s20 = sshll.u32 (!%p267_p10), %s312_s19, 2  ;;  %v831_v5 = vmov (!%p267_p10), 839922192  }
  0x10   : > { %344 = vperm.xlu0 (!%p267_p10), %747, %v341_v0   ;;  %452 = vmatprep.mubr.f32.mxu0 (!%p267_p10), %v830_v3  ;;  %v371_v4 = vld [vmem:[%s1031_s3] sm:$0xf] (!%p267_p10)  ;;  %s940_s23 = scalar_lea.vmem (!%p267_p10), [#allocation2], %s672_s20  ;;  %p316_p11 = scmp.lt.s32.totalorder (!%p267_p10), %s819_s27, 1  ;;  %v347_v6 = vunpack.c.l.s4 (!%p267_p10), %v831_v5  ;;  %v350_v9 = vshrl.u32 (!%p267_p10), %v349_v7, 7  ;;  %vm383_vm1 = vcmask (!%p267_p10), 1043456  }
  0x11   : > { %374 = vperm.xlu1 (!%p267_p10), %748, %v371_v4   ;;  %479 = vst.msk [vmem:[%s940_s23] sm:$0xf] (!%p267_p10), %vm477_vm0, %v830_v3  ;;  %v370_v21 = vld [vmem:[%s1030_s2] sm:$0xf] (!%p267_p10)  ;;  %vm379_vm2 = vcmask (!%p267_p10), 31744   ;;  %s533_s12 = sshll.u32 (!%p267_p10), %s940_s23, 4  ;;  %s979_s12 = int_to_ptr.vmem [resolvable:$true] %s533_s12 }
  0x12   : > { %v348_v8 = vunpack.c.0.s8 (!%p267_p10), %v347_v6  ;;  %s749_s18 = scalar_lea.vmem (!%p267_p10), %s979_s12, 64  ;;  %s832_s20 = smov (!%p267_p10), [#allocation2]  }
  0x13   : > { %p750_p12 = scmp.ne.s32.totalorder (!%p267_p10), %s979_s12, %s749_s18 }
  0x14   : > { %358 = vperm.xlu0 (!%p267_p10), %747, %v355_v2   ;;  %v351_v10 = vsub.s32 (!%p267_p10), %v348_v8, %v350_v9 }
  0x15   : > { %p751_p13 = pnand (!%p267_p10), %p750_p12, %p913_p4 }
  0x16   : > { %s317_s30 = scalar_select %p316_p11, %s819_s27, 1 }
  0x17   : > { %p752_p0 = pneg %p751_p13 }
  0x18   : > { %s946_s8 = sshll.u32 %s317_s30, 2  ;;  %v489_v38 = vld [vmem:[%s940_s23] sm:$0xf] }
  0x19   : > { %s323_s15 = scalar_lea.vmem %s1032_s4, %s946_s8  ;;  %s338_s21 = scalar_lea.vmem %s1034_s6, %s946_s8 }
  0x1a   : > { %v339_v11 = vld [vmem:[%s323_s15] sm:$0xf]  ;;  %478 = vst.msk [vmem:[%s338_s21] sm:$0xf] %vm477_vm0, %v830_v3  ;;  %s333_s10 = scalar_lea.vmem %s1033_s5, %s946_s8  ;;  %s684_s8 = sshll.u32 %s819_s27, 6 }
  0x1b   : > { %v340_v13 = vunpack.c.l.bf16 %v339_v11  ;;  %s977_s17 = scalar_lea.hbm %s1035_s7, %s684_s8  ;;  %s513_s27 = scalar_lea.sflag [#allocation3], %s312_s19 }
  0x21   : > { %v480_v36 = vld [vmem:[%s338_s21] sm:$0xf] }
  0x8f   : > { %v345_v12 = vpop.permute.xlu0 %344 }
  0x90   : > { %v352_v14 = vrot.slane %v345_v12, %v351_v10  ;;  %v375_v22 = vpop.permute.xlu1 %374 }
  0x92   : > { %v354_v16 = vmul.f32 %v352_v14, %v340_v13 }
  0x93   : > { %v359_v15 = vpop.permute.xlu0 %358 }
  0x94   : > { %v366_v17 = vrot.slane %v359_v15, %v351_v10 }
  0x96   : > { %v368_v18 = vadd.f32 %v366_v17, %v354_v16 }
  0x98   : > { %v369_v19 = vmax.f32 %v368_v18, 0.0 }
  0x9a   : > { %v378_v20 = vcombine.high %v369_v19, %v369_v19 }
  0x9c   : > { %678 = vmatprep.subr.msk.mxu0 %vm383_vm1, %v378_v20 }
  0x9d   : > { %679 = vmatpush1.msk.msra.mxu0 %vm383_vm1, %v369_v19 }
  0x9e   : > { %680 = vmatmul.mubr.msk.f32.vlgmr.msra.gmra.mrb[0].mxu0 %vm379_vm2, %v370_v21 }
 0x171   : > { %v454_v23 = vpop.f32.mrb[0].mxu0 }
 0x172   : > { %v455_v24 = vadd.f32 %v454_v23, %v375_v22  ;;  %v456_v25 = vpop.f32.mrb[1].mxu0 }
 0x173   : > { %v457_v26 = vadd.f32 %v456_v25, %v375_v22 }
 0x174   : > { %v481_v27 = vsel %vm383_vm1, %v455_v24, 0.0  ;;  %v490_v28 = vmul.f32 %v455_v24, %v455_v24 }
 0x175   : > { %v681_v29 = vpack.c.bf16 %v457_v26, %v455_v24  ;;  %v482_v30 = vsel %vm383_vm1, %v457_v26, 0.0  ;;  %v491_v31 = vmul.f32 %v457_v26, %v457_v26 }
 0x176   : > { %v483_v32 = vadd.f32 %v482_v30, %v481_v27  ;;  %v492_v33 = vsel %vm383_vm1, %v490_v28, 0.0 }
 0x177   : > { %682 = vst.sshfl [vmem:[%s333_s10] sm:$0x33 pattern:$0x76325410] %v681_v29  ;;  %v493_v34 = vsel %vm383_vm1, %v491_v31, 0.0 }
 0x178   : > { %484 = vadd.xlane.f32.xlu0 %v483_v32  ;;  %v494_v35 = vadd.f32 %v493_v34, %v492_v33 }
 0x17a   : > { %495 = vadd.xlane.f32.xlu1 %v494_v35 }
 0x205   : > { %v485_v37 = vpop.xlane.xlu0 %484 }
 0x206   : > { %v486_v39 = vadd.f32 %v485_v37, %v480_v36 }
 0x207   : > { %v496_v40 = vpop.xlane.xlu1 %495 }
 0x208   : > { %488 = vst.msk [vmem:[%s338_s21] sm:$0xf] %vm477_vm0, %v486_v39  ;;  %v497_v41 = vadd.f32 %v496_v40, %v489_v38  ;;  %s753_s21 = sshll.u32 %s832_s20, 4  ;;  %s754_s21 = int_to_ptr.vmem [resolvable:$false] %s753_s21 }
 0x209   : > { %s755_s22 = scalar_lea.vmem %s754_s21, 128  ;;  %p756_p1 = scmp.lt.s32.totalorder %s979_s12, %s754_s21 }
 0x20a   : > { %498 = vst.msk [vmem:[%s940_s23] sm:$0xf] %vm477_vm0, %v497_v41  ;;  %p757_p2 = scmp.lt.s32.totalorder %s755_s22, %s749_s18 }
 0x20c   : > { %p758_p3 = por %p757_p2, %p756_p1 }
 0x20e   : > { %p759_p5 = pnand %p758_p3, %p752_p0 }
 0x210   : > { %762 = shalt.err (!%p759_p5)
}
 0x211   : > { %s763_s19 = scalar_lea.hbm %s977_s17, 64  ;;  %s767_s10 = scalar_lea.hbm %s1035_s7, 128 }
 0x212   : > { %p764_p6 = scmp.ne.s32.totalorder %s977_s17, %s763_s19  ;;  %p768_p10 = scmp.lt.u32.totalorder %s977_s17, %s1035_s7 }
 0x213   : > { %p769_p11 = scmp.lt.u32.totalorder %s767_s10, %s763_s19  ;;  %p771_p13 = scmp.lt.u32.totalorder %s763_s19, %s977_s17 }
 0x214   : > { %p765_p7 = pnand %p764_p6, %p913_p4 }
 0x215   : > { %p770_p12 = por %p769_p11, %p768_p10 }
 0x216   : > { %p766_p9 = pneg %p765_p7 }
 0x217   : > { %p772_p0 = por %p771_p13, %p770_p12 }
 0x219   : > { %p773_p1 = pnand %p772_p0, %p766_p9 }
 0x21b   : > { %776 = shalt.err (!%p773_p1)
}
 0x21c   : > { %689 = dma.vmem_to_hbm [thread:$0]  (%p913_p4), %s979_s12, 64, %s977_s17, %s513_s27  }
 0x21d PF: > { %p695_p2 = scmp.ge.s32.totalorder %s827_s29, 2  ;;  %s564_s16 = sand.u32 1, %s807_s24  }
 0x21e   : > { %s565_s18 = scalar_lea.sflag [#allocation3], %s564_s16 }
 0x21f   : > { %p692_p3 = pnand %p695_p2, %p920_p8 }
 0x221   : > { %802 = dma.done.wait (!%p692_p3), %s565_s18, 64  }
 0x222   : > { %804 = vsyncadd (!%p692_p3), %s565_s18, 4294967232  ;;  %s21_s29 = sadd.s32 1, %s827_s29   ;;  %s1038_s24 = smov %s811_s25 }
 0x223   : > { %p18_p5 = scmp.ge.s32.totalorder %s21_s29, 4   ;;  %s1039_s25 = smov %s815_s26 }
 0x224   : > { %s1040_s26 = smov %s926_s14  ;;  %s1041_s27 = smov %s823_s28 }
 0x225   : > { %s1042_s28 = smov %s1044_s9  ;;  %20 = sbr.rel (!%p18_p5) target bundleno = 4 (0x4), region = 103 }
 0x22c   :  { %570 = vsyncpa [#allocation3], 1 }
 0x22d   :  { %572 = vsyncpa [#allocation3 + $0x1], 1 }

// kernel: _lambda_.7
= control target key start
LH: loop header
LB: loop body
LE: loop exit
PB: predicated region body
PF: predicated region fallthrough
CT: control target
= control target key end

     0   :  { %10 = vsyncpa [#allocation3], 0  ;;  %s863_s0 = inlined_call_operand.vmem [shape: f32[4,4], index: 0, kind: input, shape index: {}]   ;;  %s864_s1 = inlined_call_operand.vmem [shape: f32[4,1], index: 1, kind: input, shape index: {}]   ;;  %s865_s2 = inlined_call_operand.vmem [shape: f32[2,4,1], index: 2, kind: input, shape index: {}]   ;;  %s866_s3 = inlined_call_operand.vmem [shape: f32[2,4,256], index: 3, kind: input, shape index: {}]   ;;  %s867_s4 = inlined_call_operand.vmem [shape: bf16[2,4,256], index: 4, kind: input, shape index: {}]   ;;  %s868_s5 = inlined_call_operand.hbm [shape: f32[2,4,256], index: 5, kind: output, shape index: {}]  }
   0x1   :  { %12 = vsyncpa [#allocation3 + $0x1], 0  ;;  %s739_s18 = smov 0   ;;  %s741_s19 = smov 0  }
   0x2   :  { %s743_s20 = smov 0   ;;  %s745_s21 = smov 0  }
   0x3   :  { %s747_s22 = smov 0   ;;  %s749_s23 = smov 0  }
   0x4 LB: > { %s543_s24 = sadd.s32 4294967295, %s703_s23   ;;  %s544_s25 = sadd.s32 4294967294, %s703_s23   ;;  %s703_s23 = sphi %s749_s23, %s18_s23   ;;  %s699_s22 = sphi %s747_s22, %s875_s22   ;;  %s695_s21 = sphi %s745_s21, %s874_s21   ;;  %s691_s20 = sphi %s743_s20, %s873_s20   ;;  %s687_s19 = sphi %s741_s19, %s872_s19   ;;  %s683_s18 = sphi %s739_s18, %s871_s18  }
   0x5   : > { %s30_s26 = sadd.s32 1, %s699_s22  ;;  %s163_s27 = sadd.s32 1, %s691_s20 }
   0x6   : > { %p32_p0 = scmp.ge.s32.totalorder %s30_s26, 2  ;;  %p173_p1 = scmp.ne.s32.totalorder %s691_s20, %s687_s19 }
   0x7   : > { %p174_p2 = scmp.eq.s32.totalorder %s543_s24, 1  ;;  %p179_p3 = scmp.ne.s32.totalorder %s687_s19, %s683_s18 }
   0x8   : > { %s877_s26 = smov (%p32_p0, %s30_s26), 0  ;;  %p180_p5 = scmp.eq.s32.totalorder %s544_s25, 1 }
   0x9   : > { %p779_p4 = por %p174_p2, %p173_p1  ;;  %s158_s29 = ssub.s32 %s699_s22, %s877_s26 }
   0xa   : > { %p547_p6 = scmp.ge.s32.totalorder %s703_s23, 1  ;;  %p161_p7 = scmp.eq.s32.totalorder %s158_s29, 0 }
   0xb   : > { %p786_p8 = por %p180_p5, %p179_p3  ;;  %p237_p9 = scmp.lt.s32.totalorder %s703_s23, 3 }
   0xc   : > { %s792_s6 = scalar_select %p161_p7, %s691_s20, %s163_s27  }
   0xd   : > { %p238_p10 = pnand %p547_p6, %p237_p9 }
   0xe   : > { %p282_p11 = scmp.lt.s32.totalorder (!%p238_p10), %s695_s21, 1  ;;  %v705_v0 = vmov (!%p238_p10), 0.0   ;;  %v706_v1 = vmov (!%p238_p10), 0   ;;  %vm321_vm0 = vcmask (!%p238_p10), 1043456   ;;  %v308_v5 = vld [vmem:[%s863_s0] sm:$0xf] (!%p238_p10)  ;;  %v407_v9 = vlaneseq (!%p238_p10) }
   0xf   : > { %241 = sbr.rel (%p238_p10) target bundleno = 264 (0x108), region = 40  ;;  %390 = vmatprep.mubr.f32.mxu0 (!%p238_p10), %v705_v0  ;;  %623 = vset.pattern.permute.xlu0 (!%p238_p10), %v706_v1  ;;  %vm317_vm1 = vcmask (!%p238_p10), 31744   ;;  %v309_v6 = vld [vmem:[%s864_s1] sm:$0xf] (!%p238_p10)  ;;  %v707_v7 = vmov (!%p238_p10), 839922192  }
  0x10   : > { %v405_v8 = vunpack.c.l.s4 (!%p238_p10), %v707_v7  ;;  %v408_v11 = vshrl.u32 (!%p238_p10), %v407_v9, 7  ;;  %s564_s11 = sshll.u32 (!%p238_p10), %s695_s21, 7 }
  0x12   : > { %v406_v10 = vunpack.c.0.s8 (!%p238_p10), %v405_v8 }
  0x14   : > { %v409_v12 = vsub.s32 (!%p238_p10), %v406_v10, %v408_v11 }
  0x16   : > { %s283_s7 = scalar_select %p282_p11, %s695_s21, 1 }
  0x17   : > { %s708_s21 = smov [#allocation2]  }
  0x18   : > { %s562_s8 = sshll.u32 %s283_s7, 3  ;;  %s549_s9 = sshll.u32 %s283_s7, 2 }
  0x19   : > { %s294_s12 = scalar_lea.vmem %s866_s3, %s562_s8  ;;  %s285_s15 = scalar_lea.vmem %s865_s2, %s549_s9 }
  0x1a   : > { %v307_v2 = vld [vmem:[%s294_s12] sm:$0xff]  ;;  %s304_s7 = scalar_lea.vmem %s867_s4, %s549_s9  ;;  %s279_s8 = sand.u32 1, %s687_s19  }
  0x1b   : > { %v399_v3 = vld [vmem:[%s285_s15] sm:$0xf]  ;;  %v316_v4 = vcombine.high %v307_v2, %v307_v2  ;;  %s548_s10 = sshll.u32 %s279_s8, 3  ;;  %s816_s15 = scalar_lea.hbm %s868_s5, %s564_s11 }
  0x1c   : > { %402 = vperm.xlu0 %623, %v399_v3   ;;  %v397_v13 = vld [vmem:[%s304_s7] sm:$0xf]  ;;  %s281_s12 = scalar_lea.vmem [#allocation2], %s548_s10  ;;  %s421_s16 = scalar_lea.sflag [#allocation3], %s279_s8 }
  0x1d   : > { %554 = vmatprep.subr.msk.mxu0 %vm321_vm0, %v316_v4  ;;  %v398_v15 = vunpack.c.l.bf16 %v397_v13  ;;  %s437_s13 = sshll.u32 %s281_s12, 4  ;;  %s629_s24 = sshll.u32 %s708_s21, 4  ;;  %s818_s13 = int_to_ptr.vmem [resolvable:$true] %s437_s13  ;;  %s630_s24 = int_to_ptr.vmem [resolvable:$false] %s629_s24 }
  0x1e   : > { %555 = vmatpush1.msk.msra.mxu0 %vm321_vm0, %v307_v2  ;;  %s625_s17 = scalar_lea.vmem %s818_s13, 128  ;;  %s631_s25 = scalar_lea.vmem %s630_s24, 256 }
  0x1f   : > { %556 = vmatmul.mubr.msk.f32.vlgmr.msra.gmra.mrb[0].mxu0 %vm317_vm1, %v308_v5  ;;  %p626_p12 = scmp.ne.s32.totalorder %s818_s13, %s625_s17  ;;  %p632_p1 = scmp.lt.s32.totalorder %s818_s13, %s630_s24 }
  0x20   : > { %312 = vperm.xlu0 %623, %v309_v6   ;;  %p633_p2 = scmp.lt.s32.totalorder %s631_s25, %s625_s17 }
  0x21   : > { %p627_p13 = pnand %p626_p12, %p779_p4 }
  0x22   : > { %p634_p3 = por %p633_p2, %p632_p1 }
  0x23   : > { %p628_p0 = pneg %p627_p13 }
  0x25   : > { %p635_p5 = pnand %p634_p3, %p628_p0 }
  0x9b   : > { %v403_v14 = vpop.permute.xlu0 %402 }
  0x9c   : > { %v410_v16 = vrot.slane %v403_v14, %v409_v12 }
  0x9e   : > { %v412_v17 = vmul.f32 %v410_v16, %v398_v15 }
  0x9f   : > { %v313_v18 = vpop.permute.xlu0 %312 }
  0xa0   : > { %v413_v23 = vadd.f32 %v412_v17, %v307_v2 }
  0xf2   : > { %v392_v19 = vpop.f32.mrb[0].mxu0 }
  0xf3   : > { %v393_v20 = vadd.f32 %v392_v19, %v313_v18  ;;  %v394_v21 = vpop.f32.mrb[1].mxu0 }
  0xf4   : > { %v395_v22 = vadd.f32 %v394_v21, %v313_v18 }
  0xf6   : > { %v416_v24 = vcombine.low %v393_v20, %v395_v22 }
  0xf8   : > { %v418_v25 = vadd.f32 %v416_v24, %v413_v23 }
  0xfa   : > { %419 = vst [vmem:[%s281_s12] sm:$0xff] %v418_v25 }
  0xfb   : > { %638 = shalt.err (!%p635_p5)
}
  0xfc   : > { %s639_s27 = scalar_lea.hbm %s816_s15, 128  ;;  %s643_s8 = scalar_lea.hbm %s868_s5, 256 }
  0xfd   : > { %p640_p6 = scmp.ne.s32.totalorder %s816_s15, %s639_s27  ;;  %p644_p10 = scmp.lt.u32.totalorder %s816_s15, %s868_s5 }
  0xfe   : > { %p645_p11 = scmp.lt.u32.totalorder %s643_s8, %s639_s27  ;;  %p647_p13 = scmp.lt.u32.totalorder %s639_s27, %s816_s15 }
  0xff   : > { %p641_p7 = pnand %p640_p6, %p779_p4 }
 0x100   : > { %p646_p12 = por %p645_p11, %p644_p10 }
 0x101   : > { %p642_p9 = pneg %p641_p7 }
 0x102   : > { %p648_p0 = por %p647_p13, %p646_p12 }
 0x104   : > { %p649_p1 = pnand %p648_p0, %p642_p9 }
 0x106   : > { %652 = shalt.err (!%p649_p1)
}
 0x107   : > { %565 = dma.vmem_to_hbm [thread:$0]  (%p779_p4), %s818_s13, 128, %s816_s15, %s421_s16  }
 0x108 PF: > { %p571_p2 = scmp.ge.s32.totalorder %s703_s23, 2  ;;  %s449_s12 = sand.u32 1, %s683_s18  }
 0x109   : > { %s450_s9 = scalar_lea.sflag [#allocation3], %s449_s12 }
 0x10a   : > { %p568_p3 = pnand %p571_p2, %p786_p8 }
 0x10c   : > { %678 = dma.done.wait (!%p568_p3), %s450_s9, 128  }
 0x10d   : > { %680 = vsyncadd (!%p568_p3), %s450_s9, 4294967168  ;;  %s18_s23 = sadd.s32 1, %s703_s23   ;;  %s871_s18 = smov %s687_s19 }
 0x10e   : > { %p15_p5 = scmp.ge.s32.totalorder %s18_s23, 4   ;;  %s872_s19 = smov %s691_s20 }
 0x10f   : > { %s873_s20 = smov %s792_s6  ;;  %s874_s21 = smov %s699_s22 }
 0x110   : > { %s875_s22 = smov %s877_s26  ;;  %17 = sbr.rel (!%p15_p5) target bundleno = 4 (0x4), region = 81 }
 0x117   :  { %455 = vsyncpa [#allocation3], 1 }
 0x118   :  { %457 = vsyncpa [#allocation3 + $0x1], 1 }

</bundles_post_ra>
